<compile_context>
chip_gen: v7x
topology: tpu7x:2x2x1
jax: 0.10.0
libtpu: 0.0.40
codegen_flags: <defaults>
</compile_context>

<pallas_src>
import functools

import jax
import jax.numpy as jnp
from jax.experimental import pallas as pl
from jax.experimental.pallas import tpu as pltpu


_MIN_SPLIT_BYTES = 1 << 20        # below this one block is launch-dominated anyway
_MIN_PALLAS_BYTES = 256 * 1024    # below this, let XLA fuse the add (no custom call)


def _update_unit_kernel(t_ref, s_ref, o_ref):
    # Pure VPU elementwise add of one block; HBM-DMA bound, keep the body minimal.
    o_ref[...] = t_ref[...] + s_ref[...]


def _vmem_capacity_bytes() -> int:
    try:
        return int(pltpu.get_tpu_info().vmem_capacity_bytes)
    except Exception:
        return 64 << 20  # conservative fallback: v7x per-TensorCore VMEM


def _block_budget_bytes() -> int:
    # 3 refs x 2 pipeline buffers resident; keep them under ~half of physical
    # VMEM, capped at 8 MiB (v5e/v6e) and ~5 MiB on v7x (64 MiB VMEM).
    vmem = _vmem_capacity_bytes()
    return int(min(8 << 20, max(2 << 20, (vmem // 2) // 6)))


def _sublane_multiple(dtype) -> int:
    # Sub-32-bit dtypes pack rows along sublanes; keep the row tile a multiple
    # of the packed tile height so stores stay unmasked (8 f32 / 16 bf16 / 32 i8).
    itemsize = jnp.dtype(dtype).itemsize
    packing = max(1, 4 // max(1, itemsize))
    return 8 * packing


def _choose_view(shape, size):
    """Pick a lane-dense 2D (rows, width) view of the flat buffer."""
    for width in (1024, 512, 256, 128):
        if size % width == 0:
            return size // width, width
    # Fallback: (rows, last_dim).  Block last dim == full dim still satisfies
    # the (8,128) rule; stores may be masked if last dim % 128 != 0.
    # TODO(synk): if a fallback last dim is so wide that 8 rows exceed the
    # block budget a padded copy would be needed; never hit by AGCN dims.
    if len(shape) >= 2 and size % shape[-1] == 0:
        return size // shape[-1], shape[-1]
    return 1, size


def _pick_tile_rows(n: int, row_bytes: int, sublane: int) -> int:
    total = n * row_bytes
    if total <= _MIN_SPLIT_BYTES:
        # Launch-dominated regime: one block, one DMA per operand.
        return n
    budget = _block_budget_bytes()
    tile = budget // row_bytes
    # Keep >=2 (>=4 for larger arrays) grid steps so the "parallel" row axis
    # can be sharded across TensorCores (v7x has 2 TCs per chip).
    min_steps = 4 if total >= (4 << 20) else 2
    tile = min(tile, pl.cdiv(n, min_steps))
    tile = max(sublane, (tile // sublane) * sublane)
    return min(tile, n)


def _update_impl(target, source, *, alias):
    assert target.shape == source.shape, (
        "source dimension must be equal to target dimension")
    assert target.dtype == source.dtype

    orig_shape = target.shape
    n, d = _choose_view(target.shape, target.size)
    t2 = target.reshape(n, d)
    s2 = source.reshape(n, d)

    itemsize = jnp.dtype(target.dtype).itemsize
    row_bytes = d * itemsize
    sublane = _sublane_multiple(target.dtype)
    tile_r = _pick_tile_rows(n, row_bytes, sublane)
    grid = (pl.cdiv(n, tile_r),)

    # Explicit scoped-VMEM budget: 3 refs x 2 buffers of the actual block plus
    # headroom, pinned below physical capacity for every generation.
    block_bytes = tile_r * row_bytes
    vmem_cap = _vmem_capacity_bytes()
    vmem_limit = int(max(16 << 20,
                         min(6 * block_bytes + (8 << 20), vmem_cap - (8 << 20))))

    # Only wire the in-place alias when the grid divides evenly (conservative:
    # avoids relying on alias + masked partial final block).  The donated
    # buffer can still be reused by XLA for the output either way.
    use_alias = bool(alias) and (n % tile_r == 0)

    spec = pl.BlockSpec((tile_r, d), lambda i: (i, 0))

    out = pl.pallas_call(
        _update_unit_kernel,
        out_shape=jax.ShapeDtypeStruct((n, d), t2.dtype),
        grid_spec=pltpu.PrefetchScalarGridSpec(
            num_scalar_prefetch=0,
            grid=grid,
            in_specs=[spec, spec],
            out_specs=spec,
        ),
        compiler_params=pltpu.CompilerParams(
            dimension_semantics=("parallel",),
            vmem_limit_bytes=vmem_limit),
        input_output_aliases=({0: 0} if use_alias else {}),
    )(t2, s2)

    return out.reshape(orig_shape)


# Out-of-place (PyTorch semantics) and truly-donated in-place variants.  The
# donated variant pairs the Pallas alias with real jit-level buffer donation,
# so XLA does not insert a protective copy of `target`.
_update_pallas = jax.jit(functools.partial(_update_impl, alias=False))
_update_pallas_donated = jax.jit(functools.partial(_update_impl, alias=True),
                                 donate_argnums=(0,))

# Tiny-input fallback: let XLA fuse the add into the producer instead of
# paying custom-call launch overhead + a standalone 2R+1W round trip.
_plain_add = jax.jit(lambda t, s: t + s)


class GraphConvolutionLayerUpdate:
    """JAX/Pallas port of _GraphConvolutionLayer_Update.

    Holds two parameter-free update units: unit 0 for object nodes (dim_obj),
    unit 1 for relation nodes (dim_rel).  `unit_id` only selects which unit is
    used — both compute target + source, faithful to the PyTorch module.
    """

    def __init__(self, dim_obj: int, dim_rel: int, *,
                 min_pallas_bytes: int = _MIN_PALLAS_BYTES):
        self.dims = (dim_obj, dim_rel)  # kept only for shape checking
        self.min_pallas_bytes = min_pallas_bytes

    def __call__(self, target: jax.Array, source: jax.Array, unit_id: int, *,
                 donate_target: bool = False,
                 force_pallas: bool = False) -> jax.Array:
        assert unit_id in (0, 1)
        assert target.shape[-1] == self.dims[unit_id], (
            f"unit {unit_id} expects feature dim {self.dims[unit_id]}, "
            f"got {target.shape[-1]}")
        if not force_pallas and target.nbytes < self.min_pallas_bytes:
            return _plain_add(target, source)
        if donate_target:
            return _update_pallas_donated(target, source)
        return _update_pallas(target, source)


if __name__ == "__main__":
    dim_obj, dim_rel = 256, 128
    n_obj, n_rel = 16, 32

    key = jax.random.PRNGKey(0)
    k1, k2, k3, k4, k5, k6 = jax.random.split(key, 6)

    # Object-node features (unit_id = 0) — tiny relation-head shape.
    target_obj = jax.random.normal(k1, (n_obj, dim_obj), dtype=jnp.float32)
    source_obj = jax.random.normal(k2, (n_obj, dim_obj), dtype=jnp.float32)

    # Relation-node features (unit_id = 1).
    target_rel = jax.random.normal(k3, (n_rel, dim_rel), dtype=jnp.float32)
    source_rel = jax.random.normal(k4, (n_rel, dim_rel), dtype=jnp.float32)

    # Larger, non-tile-multiple node count: exercises the lane-dense reshape,
    # a multi-step parallel grid, and a masked partial final block.
    n_big = 2052
    target_big = jax.random.normal(k5, (n_big, dim_obj), dtype=jnp.float32)
    source_big = jax.random.normal(k6, (n_big, dim_obj), dtype=jnp.float32)

    layer = GraphConvolutionLayerUpdate(dim_obj, dim_rel)

    # Tiny shapes: force through the Pallas kernel to exercise it.
    out_obj = layer(target_obj, source_obj, unit_id=0, force_pallas=True)
    out_rel = layer(target_rel, source_rel, unit_id=1, force_pallas=True)
    # Big shape: default dispatch -> Pallas path with >=2 parallel row blocks.
    out_big = layer(target_big, source_big, unit_id=0)
    # Donate path: real buffer donation + Pallas in/out alias (single block).
    tgt_don = jnp.copy(target_obj)
    out_don = layer(tgt_don, source_obj, unit_id=0,
                    donate_target=True, force_pallas=True)

    jax.block_until_ready(out_obj)
    jax.block_until_ready(out_rel)
    jax.block_until_ready(out_big)
    jax.block_until_ready(out_don)

    # Correctness checks against the trivial reference.
    assert out_obj.shape == (n_obj, dim_obj)
    assert out_rel.shape == (n_rel, dim_rel)
    assert out_big.shape == (n_big, dim_obj)
    assert jnp.allclose(out_obj, target_obj + source_obj, atol=1e-6)
    assert jnp.allclose(out_rel, target_rel + source_rel, atol=1e-6)
    assert jnp.allclose(out_big, target_big + source_big, atol=1e-6)
    assert jnp.allclose(out_don, target_obj + source_obj, atol=1e-6)

    print("KERNEL_OK")
</pallas_src>

<mosaic_0001>
module attributes {stable_mosaic.version = 11 : i64} {
  func.func @_update_unit_kernel(%arg0: i32, %arg1: memref<4x1024xf32, #tpu.memory_space<vmem>>, %arg2: memref<4x1024xf32, #tpu.memory_space<vmem>>, %arg3: memref<4x1024xf32, #tpu.memory_space<vmem>>) attributes {dimension_semantics = [#tpu.dimension_semantics<parallel>], iteration_bounds = array<i64: 1>, scalar_prefetch = 0 : i64, scratch_operands = 0 : i64, tpu.core_type = #tpu.core_type<tc>, window_params = [{transform_indices = @transform_0, window_bounds = array<i64: 4, 1024>}, {transform_indices = @transform_1, window_bounds = array<i64: 4, 1024>}, {transform_indices = @transform_2, window_bounds = array<i64: 4, 1024>}]} {
    %c0 = arith.constant 0 : index
    %c0_0 = arith.constant 0 : index
    %0 = vector.load %arg1[%c0, %c0_0] : memref<4x1024xf32, #tpu.memory_space<vmem>>, vector<4x1024xf32>
    %c0_1 = arith.constant 0 : index
    %c0_2 = arith.constant 0 : index
    %1 = vector.load %arg2[%c0_1, %c0_2] : memref<4x1024xf32, #tpu.memory_space<vmem>>, vector<4x1024xf32>
    %2 = arith.addf %0, %1 : vector<4x1024xf32>
    %c0_3 = arith.constant 0 : index
    %c0_4 = arith.constant 0 : index
    %3 = vector.load %arg3[%c0_3, %c0_4] : memref<4x1024xf32, #tpu.memory_space<vmem>>, vector<4x1024xf32>
    tpu.vector_store %arg3[%c0_3, %c0_4], %2 {strides = array<i32>} : memref<4x1024xf32, #tpu.memory_space<vmem>>, vector<4x1024xf32>,
    return
  }
  func.func @transform_0(%arg0: i32) -> (i32, i32) {
    %c0_i32 = arith.constant 0 : i32
    %c0_i32_0 = arith.constant 0 : i32
    return %arg0, %c0_i32 : i32, i32
  }
  func.func @transform_1(%arg0: i32) -> (i32, i32) {
    %c0_i32 = arith.constant 0 : i32
    %c0_i32_0 = arith.constant 0 : i32
    return %arg0, %c0_i32 : i32, i32
  }
  func.func @transform_2(%arg0: i32) -> (i32, i32) {
    %c0_i32 = arith.constant 0 : i32
    %c0_i32_0 = arith.constant 0 : i32
    return %arg0, %c0_i32 : i32, i32
  }
}

</mosaic_0001>

<bundles_post_ra>
// kernel: _update_impl.1
= control target key start
LH: loop header
LB: loop body
LE: loop exit
PB: predicated region body
PF: predicated region fallthrough
CT: control target
= control target key end

     0   :  { %s82_s0 = inlined_call_operand.vmem [shape: f32[4,1024], index: 0, kind: input, shape index: {}]   ;;  %s83_s1 = inlined_call_operand.vmem [shape: f32[4,1024], index: 1, kind: input, shape index: {}]   ;;  %s84_s2 = inlined_call_operand.vmem [shape: f32[4,1024], index: 2, kind: output, shape index: {}]  }
   0x1   :  { %v11_v0 = vld [vmem:[%s82_s0] sm:$0xff]  ;;  %v12_v2 = vld [vmem:[%s82_s0 + $0x8] sm:$0xff]  ;;  %v13_v5 = vld [vmem:[%s82_s0 + $0x10] sm:$0xff] }
   0x2   :  { %v15_v1 = vld [vmem:[%s83_s1] sm:$0xff]  ;;  %v16_v4 = vld [vmem:[%s83_s1 + $0x8] sm:$0xff]  ;;  %v17_v6 = vld [vmem:[%s83_s1 + $0x10] sm:$0xff] }
   0x3   :  { %v19_v3 = vadd.f32 %v15_v1, %v11_v0  ;;  %v20_v7 = vadd.f32 %v16_v4, %v12_v2  ;;  %v21_v8 = vadd.f32 %v17_v6, %v13_v5  ;;  %v14_v9 = vld [vmem:[%s82_s0 + $0x18] sm:$0xff] }
   0x4   :  { %v18_v10 = vld [vmem:[%s83_s1 + $0x18] sm:$0xff] }
   0x5   :  { %23 = vst [vmem:[%s84_s2] sm:$0xff] %v19_v3  ;;  %v22_v11 = vadd.f32 %v18_v10, %v14_v9  ;;  %24 = vst [vmem:[%s84_s2 + $0x8] sm:$0xff] %v20_v7 }
   0x6   :  { %25 = vst [vmem:[%s84_s2 + $0x10] sm:$0xff] %v21_v8 }
   0x7   :  { %26 = vst [vmem:[%s84_s2 + $0x18] sm:$0xff] %v22_v11 }

</bundles_post_ra>
